<compile_context>
chip_gen: v6e
topology: v6e:2x2x1
jax: 0.10.0
libtpu: 0.0.40
codegen_flags: <defaults>
</compile_context>

<pallas_src>
import math
import functools

import jax
import jax.numpy as jnp
from jax.experimental import pallas as pl
from jax.experimental.pallas import tpu as pltpu


# ----------------------------------------------------------------------------
# Tiling constants
# ----------------------------------------------------------------------------
TM = 512                      # row tile for the conv matmuls (sweep 512..2048)
TT = 256                      # time tile for the linear/pos-enc kernel
VMEM_LIMIT = 48 * 1024 * 1024 # explicit budget; fits v7x 64 MiB with headroom
                              # (resident bf16 weight <= ~5 MB + 2x bf16 row
                              #  tiles + 2x out tiles << 48 MB for odim <= 512)


def _round_up(x, m):
    return ((x + m - 1) // m) * m


# ----------------------------------------------------------------------------
# Pallas kernels
# ----------------------------------------------------------------------------
def _matmul_bias_relu_kernel(x_ref, w_ref, b_ref, o_ref):
    # o = relu(x @ w + b); x/w bf16 -> f32 accumulate on the MXU.
    acc = jnp.dot(x_ref[...], w_ref[...], preferred_element_type=jnp.float32)
    acc = jnp.maximum(acc + b_ref[...], 0.0)          # (1, Np) broadcasts
    o_ref[...] = acc.astype(o_ref.dtype)


def _linear_posenc_kernel(x_ref, w_ref, b_ref, pe_ref, o_ref, *, xscale):
    # o = (x @ w + b) * xscale + pe    (PositionalEncoding, dropout = identity)
    acc = jnp.dot(x_ref[0], w_ref[...], preferred_element_type=jnp.float32)
    acc = (acc + b_ref[...]) * xscale + pe_ref[...]
    o_ref[...] = acc[None].astype(o_ref.dtype)


def pallas_matmul_bias_relu(x, w, b):
    """x: (M, K) bf16, w: (K, Np) bf16, b: (1, Np) f32 -> (M, Np) bf16."""
    M, K = x.shape
    Kw, Np = w.shape
    tm = M if M <= TM else TM          # tm == full dim or a multiple of 8
    grid = (pl.cdiv(M, tm),)
    return pl.pallas_call(
        _matmul_bias_relu_kernel,
        out_shape=jax.ShapeDtypeStruct((M, Np), jnp.bfloat16),
        grid=grid,
        in_specs=[
            pl.BlockSpec((tm, K), lambda i: (i, 0)),      # row tile (pipelined)
            pl.BlockSpec((Kw, Np), lambda i: (0, 0)),     # weight: resident
            pl.BlockSpec((1, Np), lambda i: (0, 0)),      # bias: resident
        ],
        out_specs=pl.BlockSpec((tm, Np), lambda i: (i, 0)),
        compiler_params=pltpu.CompilerParams(
            dimension_semantics=("parallel",),
            vmem_limit_bytes=VMEM_LIMIT),
    )(x, w, b)


def pallas_linear_posenc(x, w, b, pe, xscale):
    """x: (B, T, K) bf16, w: (K, Np) bf16, b: (1, Np) f32, pe: (T, Np) f32."""
    B, T, K = x.shape
    Kw, Np = w.shape
    tt = T if T <= TT else TT
    grid = (B, pl.cdiv(T, tt))
    kernel = functools.partial(_linear_posenc_kernel, xscale=float(xscale))
    return pl.pallas_call(
        kernel,
        out_shape=jax.ShapeDtypeStruct((B, T, Np), jnp.float32),
        grid=grid,
        in_specs=[
            pl.BlockSpec((1, tt, K), lambda bi, ti: (bi, ti, 0)),
            pl.BlockSpec((Kw, Np), lambda bi, ti: (0, 0)),   # weight resident
            pl.BlockSpec((1, Np), lambda bi, ti: (0, 0)),    # bias resident
            pl.BlockSpec((tt, Np), lambda bi, ti: (ti, 0)),  # pe: time-indexed,
        ],                                                   # no B-fold tiling
        out_specs=pl.BlockSpec((1, tt, Np), lambda bi, ti: (bi, ti, 0)),
        compiler_params=pltpu.CompilerParams(
            dimension_semantics=("parallel", "parallel"),
            vmem_limit_bytes=VMEM_LIMIT),
    )(x, w, b, pe)


# ----------------------------------------------------------------------------
# Glue (plain JAX): NHWC im2col, positional-encoding table, mask subsampling
# ----------------------------------------------------------------------------
def im2col_3x3_s2_nhwc(x):
    """x: (B, H, W, C) -> (B*Ho*Wo, 9*C).  Column index = (kh*3 + kw)*C + c."""
    B, H, W, C = x.shape
    Ho = (H - 3) // 2 + 1
    Wo = (W - 3) // 2 + 1
    taps = [x[:, kh:kh + 2 * Ho:2, kw:kw + 2 * Wo:2, :]
            for kh in range(3) for kw in range(3)]           # each (B,Ho,Wo,C)
    p = jnp.stack(taps, axis=3)                              # (B, Ho, Wo, 9, C)
    return p.reshape(B * Ho * Wo, 9 * C), Ho, Wo


def sinusoidal_pe(length, d_model):
    pos = jnp.arange(length, dtype=jnp.float32)[:, None]
    div = jnp.exp(jnp.arange(0, d_model, 2, dtype=jnp.float32)
                  * (-math.log(10000.0) / d_model))
    pe = jnp.zeros((length, d_model), dtype=jnp.float32)
    pe = pe.at[:, 0::2].set(jnp.sin(pos * div))
    pe = pe.at[:, 1::2].set(jnp.cos(pos * div))
    return pe


# ----------------------------------------------------------------------------
# Parameters
# ----------------------------------------------------------------------------
def init_params(key, idim, odim):
    """PyTorch-layout parameters (used by the pure-JAX reference)."""
    f3 = ((((idim - 1) // 2 - 1) // 2 - 1) // 2)
    ks = jax.random.split(key, 8)
    s = 0.1
    return dict(
        w1=s * jax.random.normal(ks[0], (odim, 1, 3, 3), jnp.float32),
        b1=s * jax.random.normal(ks[1], (odim,), jnp.float32),
        w2=s * jax.random.normal(ks[2], (odim, odim, 3, 3), jnp.float32),
        b2=s * jax.random.normal(ks[3], (odim,), jnp.float32),
        w3=s * jax.random.normal(ks[4], (odim, odim, 3, 3), jnp.float32),
        b3=s * jax.random.normal(ks[5], (odim,), jnp.float32),
        wlin=s * jax.random.normal(ks[6], (odim, odim * f3), jnp.float32),
        blin=s * jax.random.normal(ks[7], (odim,), jnp.float32),
    )


def prepare_params(params, idim, odim):
    """One-time relayout: bf16 matmul weights, N padded to a 128 multiple."""
    Np = _round_up(odim, 128)

    def conv_mat(w):                       # OIHW -> ((kh,kw,ci), co), pad N
        Co, Ci, _, _ = w.shape
        m = w.transpose(2, 3, 1, 0).reshape(9 * Ci, Co)
        m = jnp.pad(m, ((0, 0), (0, Np - Co)))
        return m.astype(jnp.bfloat16)

    def bias_vec(b):
        return jnp.pad(b, (0, Np - b.shape[0])).reshape(1, Np).astype(jnp.float32)

    f3 = ((((idim - 1) // 2 - 1) // 2 - 1) // 2)
    # PyTorch flatten order is (c, f); NHWC activations flatten as (f, c):
    # wlin_mat[f*C + c, o] = wlin[o, c*f3 + f].  Pre-transposed once here.
    wlin_r = params["wlin"].reshape(odim, odim, f3)          # [o, c, f]
    wlin_mat = wlin_r.transpose(2, 1, 0).reshape(f3 * odim, odim)
    wlin_mat = jnp.pad(wlin_mat, ((0, 0), (0, Np - odim))).astype(jnp.bfloat16)

    return dict(
        Np=Np,
        wmat1=conv_mat(params["w1"]), b1=bias_vec(params["b1"]),
        wmat2=conv_mat(params["w2"]), b2=bias_vec(params["b2"]),
        wmat3=conv_mat(params["w3"]), b3=bias_vec(params["b3"]),
        wlin_mat=wlin_mat, blin=bias_vec(params["blin"]),
    )


# ----------------------------------------------------------------------------
# Module forward
# ----------------------------------------------------------------------------
def conv2d_subsampling8(prep, x, x_mask, odim):
    """x: (B, T, idim) f32, x_mask: (B, 1, T) bool -> ((B, T', odim), (B, 1, T'))."""
    B = x.shape[0]
    Np = prep["Np"]

    h = x.astype(jnp.bfloat16)[:, :, :, None]                 # NHWC (B,T,idim,1)
    for wmat, bvec in ((prep["wmat1"], prep["b1"]),
                       (prep["wmat2"], prep["b2"]),
                       (prep["wmat3"], prep["b3"])):
        patches, Ho, Wo = im2col_3x3_s2_nhwc(h)                # (M, 9*Ci) bf16
        out = pallas_matmul_bias_relu(patches, wmat, bvec)     # (M, Np)   bf16
        h = out[:, :odim].reshape(B, Ho, Wo, odim)             # stay in NHWC

    _, t3, f3, C = h.shape
    xf = h.reshape(B, t3, f3 * C)                              # (f, c) flatten
    pe = jnp.pad(sinusoidal_pe(t3, odim), ((0, 0), (0, Np - odim)))
    y = pallas_linear_posenc(xf, prep["wlin_mat"], prep["blin"], pe,
                             math.sqrt(odim))                  # (B, t3, Np)
    y = y[..., :odim]

    if x_mask is None:
        return y, None
    m = x_mask[:, :, :-2:2][:, :, :-2:2][:, :, :-2:2]
    return y, m


# ----------------------------------------------------------------------------
# Pure-JAX f32 reference (for correctness check)
# ----------------------------------------------------------------------------
def reference(params, x, x_mask, odim):
    h = x[:, None, :, :]
    for w, b in ((params["w1"], params["b1"]),
                 (params["w2"], params["b2"]),
                 (params["w3"], params["b3"])):
        h = jax.lax.conv_general_dilated(
            h, w, window_strides=(2, 2), padding="VALID",
            dimension_numbers=("NCHW", "OIHW", "NCHW"))
        h = jax.nn.relu(h + b[None, :, None, None])
    B, Co, t3, f3 = h.shape
    xf = h.transpose(0, 2, 1, 3).reshape(B, t3, Co * f3)
    y = xf @ params["wlin"].T + params["blin"]
    y = y * math.sqrt(odim) + sinusoidal_pe(t3, odim)[None]
    m = x_mask[:, :, :-2:2][:, :, :-2:2][:, :, :-2:2]
    return y, m


# ----------------------------------------------------------------------------
if __name__ == "__main__":
    B, T, idim, odim = 2, 32, 33, 32      # small shapes; T'=3, f'=3

    key = jax.random.PRNGKey(0)
    kx, kp = jax.random.split(key)
    x = jax.random.normal(kx, (B, T, idim), jnp.float32)
    x_mask = jnp.ones((B, 1, T), dtype=bool)
    params = init_params(kp, idim, odim)
    prep = prepare_params(params, idim, odim)

    y, m = conv2d_subsampling8(prep, x, x_mask, odim)
    y = jax.block_until_ready(y)
    m = jax.block_until_ready(m)

    y_ref, m_ref = reference(params, x, x_mask, odim)
    assert y.shape == y_ref.shape, (y.shape, y_ref.shape)
    assert m.shape == m_ref.shape, (m.shape, m_ref.shape)
    assert bool(jnp.all(m == m_ref))
    # bf16 MXU inputs with f32 accumulation -> slightly looser tolerance.
    assert jnp.allclose(y, y_ref, atol=1e-1, rtol=5e-2), float(
        jnp.max(jnp.abs(y - y_ref)))

    print("KERNEL_OK")
</pallas_src>

<mosaic_0001>
module attributes {stable_mosaic.version = 11 : i64} {
  func.func @_matmul_bias_relu_kernel(%arg0: i32, %arg1: memref<480x9xbf16, #tpu.memory_space<vmem>>, %arg2: memref<9x128xbf16, #tpu.memory_space<vmem>>, %arg3: memref<1x128xf32, #tpu.memory_space<vmem>>, %arg4: memref<480x128xbf16, #tpu.memory_space<vmem>>) attributes {dimension_semantics = [#tpu.dimension_semantics<parallel>], iteration_bounds = array<i64: 1>, scalar_prefetch = 0 : i64, scratch_operands = 0 : i64, tpu.core_type = #tpu.core_type<tc>, window_params = [{transform_indices = @transform_0, window_bounds = array<i64: 480, 9>}, {pipeline_mode = #tpu.pipeline_mode<synchronous>, transform_indices = @transform_1, window_bounds = array<i64: 9, 128>}, {pipeline_mode = #tpu.pipeline_mode<synchronous>, transform_indices = @transform_2, window_bounds = array<i64: 1, 128>}, {transform_indices = @transform_3, window_bounds = array<i64: 480, 128>}]} {
    %c0 = arith.constant 0 : index
    %c0_0 = arith.constant 0 : index
    %0 = vector.load %arg1[%c0, %c0_0] : memref<480x9xbf16, #tpu.memory_space<vmem>>, vector<480x9xbf16>
    %c0_1 = arith.constant 0 : index
    %c0_2 = arith.constant 0 : index
    %1 = vector.load %arg2[%c0_1, %c0_2] : memref<9x128xbf16, #tpu.memory_space<vmem>>, vector<9x128xbf16>
    %cst = arith.constant dense<0.000000e+00> : vector<480x128xf32>
    %2 = tpu.matmul %0, %1, %cst {dimension_numbers = #tpu.dot_dimension_numbers<[1], [0], [0], [1], [0, 0, 1, 1], [], []>} : vector<480x9xbf16>, vector<9x128xbf16>, vector<480x128xf32> -> vector<480x128xf32>
    %c0_3 = arith.constant 0 : index
    %c0_4 = arith.constant 0 : index
    %3 = vector.load %arg3[%c0_3, %c0_4] : memref<1x128xf32, #tpu.memory_space<vmem>>, vector<1x128xf32>
    %4 = vector.broadcast %3 : vector<1x128xf32> to vector<480x128xf32>
    %5 = arith.addf %2, %4 : vector<480x128xf32>
    %cst_5 = arith.constant 0.000000e+00 : f32
    %6 = vector.broadcast %cst_5 : f32 to vector<480x128xf32>
    %7 = arith.maximumf %5, %6 : vector<480x128xf32>
    %8 = arith.truncf %7 : vector<480x128xf32> to vector<480x128xbf16>
    %c0_6 = arith.constant 0 : index
    %c0_7 = arith.constant 0 : index
    %9 = vector.load %arg4[%c0_6, %c0_7] : memref<480x128xbf16, #tpu.memory_space<vmem>>, vector<480x128xbf16>
    tpu.vector_store %arg4[%c0_6, %c0_7], %8 {strides = array<i32>} : memref<480x128xbf16, #tpu.memory_space<vmem>>, vector<480x128xbf16>,
    return
  }
  func.func @transform_0(%arg0: i32) -> (i32, i32) {
    %c0_i32 = arith.constant 0 : i32
    %c0_i32_0 = arith.constant 0 : i32
    return %arg0, %c0_i32 : i32, i32
  }
  func.func @transform_1(%arg0: i32) -> (i32, i32) {
    %c0_i32 = arith.constant 0 : i32
    %c0_i32_0 = arith.constant 0 : i32
    %c0_i32_1 = arith.constant 0 : i32
    return %c0_i32, %c0_i32_0 : i32, i32
  }
  func.func @transform_2(%arg0: i32) -> (i32, i32) {
    %c0_i32 = arith.constant 0 : i32
    %c0_i32_0 = arith.constant 0 : i32
    %c0_i32_1 = arith.constant 0 : i32
    return %c0_i32, %c0_i32_0 : i32, i32
  }
  func.func @transform_3(%arg0: i32) -> (i32, i32) {
    %c0_i32 = arith.constant 0 : i32
    %c0_i32_0 = arith.constant 0 : i32
    return %arg0, %c0_i32 : i32, i32
  }
}

</mosaic_0001>

<bundles_post_ra>
// kernel: tpu_custom_call.1
= control target key start
LH: loop header
LB: loop body
LE: loop exit
PB: predicated region body
PF: predicated region fallthrough
CT: control target
= control target key end

     0   :  { %vm331_vm0 = vcmask 1043456   ;;  %vm332_vm1 = vcmask 1044480   ;;  %v1500_v2 = vmov 65535   ;;  %vm240_vm2 = vcmask 72704   ;;  %s1715_s0 = inlined_call_operand.vmem [shape: bf16[480,9], index: 0, kind: input, shape index: {}]   ;;  %s1716_s1 = inlined_call_operand.vmem [shape: bf16[9,128], index: 1, kind: input, shape index: {}]   ;;  %s1717_s2 = inlined_call_operand.vmem [shape: f32[1,128], index: 2, kind: input, shape index: {}]   ;;  %s1718_s3 = inlined_call_operand.hbm [shape: bf16[480,128], index: 3, kind: output, shape index: {}]  }
   0x1   :  { %v1447_v0 = vld [vmem:[%s1716_s1] sm:$0x1f]   ;;  %v333_v3 = vsel %vm331_vm0, 4294967295, %v1500_v2  ;;  %v1449_v7 = vld [vmem:[%s1715_s0 + $0x8] sm:$0xff]   ;;  %v1452_v9 = vld [vmem:[%s1715_s0 + $0x10] sm:$0xff]  }
   0x2   :  { %v1448_v1 = vld [vmem:[%s1715_s0] sm:$0xff]   ;;  %v334_v4 = vsel %vm332_vm1, %v333_v3, 0  ;;  %v1451_v8 = vld [vmem:[%s1715_s0 + $0x88] sm:$0xff]   ;;  %v1454_v10 = vld [vmem:[%s1715_s0 + $0x90] sm:$0xff]  }
   0x3   :  { %1381 = vmatprep.mubr.msk.bf16.mxu0 %vm240_vm2, %v1448_v1  ;;  %v336_v5 = vand.u32 %v1447_v0, %v334_v4  ;;  %v1450_v6 = vld [vmem:[%s1715_s0 + $0x80] sm:$0xff]   ;;  %v1453_v11 = vld [vmem:[%s1715_s0 + $0x18] sm:$0xff]   ;;  %v1457_v15 = vld [vmem:[%s1715_s0 + $0x28] sm:$0xff]  }
   0x4   :  { %1413 = vmatprep.mubr.msk.bf16.mxu1 %vm240_vm2, %v1450_v6  ;;  %v1455_v12 = vld [vmem:[%s1715_s0 + $0x98] sm:$0xff]   ;;  %v1456_v13 = vld [vmem:[%s1715_s0 + $0x20] sm:$0xff]   ;;  %v1459_v16 = vld [vmem:[%s1715_s0 + $0xa8] sm:$0xff]  }
   0x5   :  { %1379 = vmatprep.subr.bf16.mxu0 %v336_v5  ;;  %1441 = vmatprep.subr.bf16.mxu1 %v336_v5  ;;  %v1458_v14 = vld [vmem:[%s1715_s0 + $0xa0] sm:$0xff]   ;;  %v1460_v17 = vld [vmem:[%s1715_s0 + $0x30] sm:$0xff]   ;;  %v1461_v19 = vld [vmem:[%s1715_s0 + $0x38] sm:$0xff]  }
   0x6   :  { %1380 = vmatpush3.bf16.msra.mxu0 %v336_v5  ;;  %1442 = vmatpush3.bf16.msra.mxu1 %v336_v5  ;;  %v1462_v18 = vld [vmem:[%s1715_s0 + $0xb0] sm:$0xff]   ;;  %v1463_v20 = vld [vmem:[%s1715_s0 + $0xb8] sm:$0xff]   ;;  %v1464_v21 = vld [vmem:[%s1715_s0 + $0x40] sm:$0xff]  }
   0x7   :  { %v1466_v22 = vld [vmem:[%s1715_s0 + $0xc0] sm:$0xff]  }
   0x9   :  { %1382 = vmatmul.mubr.msk.bf16.vlgmr.msra.gmra.mxu0 %vm240_vm2, %v1449_v7  ;;  %1414 = vmatmul.mubr.msk.bf16.vlgmr.msra.gmra.mxu1 %vm240_vm2, %v1451_v8 }
   0xa   :  { %1385 = vmatprep.mubr.msk.bf16.mxu0 %vm240_vm2, %v1452_v9  ;;  %1417 = vmatprep.mubr.msk.bf16.mxu1 %vm240_vm2, %v1454_v10 }
  0x11   :  { %1386 = vmatmul.mubr.msk.bf16.gmra.mxu0 %vm240_vm2, %v1453_v11  ;;  %1418 = vmatmul.mubr.msk.bf16.gmra.mxu1 %vm240_vm2, %v1455_v12 }
  0x12   :  { %1389 = vmatprep.mubr.msk.bf16.mxu0 %vm240_vm2, %v1456_v13  ;;  %1421 = vmatprep.mubr.msk.bf16.mxu1 %vm240_vm2, %v1458_v14 }
  0x19   :  { %1390 = vmatmul.mubr.msk.bf16.gmra.mxu0 %vm240_vm2, %v1457_v15  ;;  %1422 = vmatmul.mubr.msk.bf16.gmra.mxu1 %vm240_vm2, %v1459_v16 }
  0x1a   :  { %1393 = vmatprep.mubr.msk.bf16.mxu0 %vm240_vm2, %v1460_v17  ;;  %1425 = vmatprep.mubr.msk.bf16.mxu1 %vm240_vm2, %v1462_v18 }
  0x1b   :  { %8 = vsyncpa [#allocation3], 0  ;;  %v1465_v23 = vld [vmem:[%s1715_s0 + $0x48] sm:$0xff]   ;;  %v1468_v25 = vld [vmem:[%s1715_s0 + $0x50] sm:$0xff]  }
  0x1c   :  { %v1467_v24 = vld [vmem:[%s1715_s0 + $0xc8] sm:$0xff]   ;;  %v1470_v26 = vld [vmem:[%s1715_s0 + $0xd0] sm:$0xff]   ;;  %v1469_v27 = vld [vmem:[%s1715_s0 + $0x58] sm:$0xff]  }
  0x1d   :  { %v1471_v28 = vld [vmem:[%s1715_s0 + $0xd8] sm:$0xff]   ;;  %v1472_v29 = vld [vmem:[%s1715_s0 + $0x60] sm:$0xff]   ;;  %v1473_v31 = vld [vmem:[%s1715_s0 + $0x68] sm:$0xff]  }
  0x1e   :  { %v1474_v30 = vld [vmem:[%s1715_s0 + $0xe0] sm:$0xff]   ;;  %v1475_v32 = vld [vmem:[%s1715_s0 + $0xe8] sm:$0xff]   ;;  %v1476_v33 = vld [vmem:[%s1715_s0 + $0x70] sm:$0xff]  }
  0x1f   :  { %v1477_v34 = vld [vmem:[%s1715_s0 + $0x78] sm:$0xff]   ;;  %v1650_v35 = vld [vmem:[%s1717_s2] ss:$0 sm:$0xff]  ;;  %s1501_s0 = smov [#allocation2]  }
  0x20   :  { %s976_s2 = sshll.u32 %s1501_s0, 4  ;;  %s977_s2 = int_to_ptr.vmem [resolvable:$true] %s976_s2 }
  0x21   :  { %1394 = vmatmul.mubr.msk.bf16.gmra.mxu0 %vm240_vm2, %v1461_v19  ;;  %1426 = vmatmul.mubr.msk.bf16.gmra.mxu1 %vm240_vm2, %v1463_v20  ;;  %s1478_s1 = scalar_lea.vmem %s977_s2, 3840  ;;  %p1483_p1 = scmp.lt.s32.totalorder %s977_s2, %s977_s2 }
  0x22   :  { %1397 = vmatprep.mubr.msk.bf16.mxu0 %vm240_vm2, %v1464_v21  ;;  %1429 = vmatprep.mubr.msk.bf16.mxu1 %vm240_vm2, %v1466_v22  ;;  %p1479_p0 = scmp.ne.s32.totalorder %s977_s2, %s1478_s1  ;;  %p1484_p2 = scmp.lt.s32.totalorder %s1478_s1, %s1478_s1 }
  0x24   :  { %p1485_p3 = por %p1484_p2, %p1483_p1 }
  0x26   :  { %p1486_p4 = pnand %p1485_p3, %p1479_p0 }
  0x29   :  { %1398 = vmatmul.mubr.msk.bf16.gmra.mxu0 %vm240_vm2, %v1465_v23  ;;  %1430 = vmatmul.mubr.msk.bf16.gmra.mxu1 %vm240_vm2, %v1467_v24 }
  0x2a   :  { %1401 = vmatprep.mubr.msk.bf16.mxu0 %vm240_vm2, %v1468_v25  ;;  %1433 = vmatprep.mubr.msk.bf16.mxu1 %vm240_vm2, %v1470_v26 }
  0x31   :  { %1402 = vmatmul.mubr.msk.bf16.gmra.mxu0 %vm240_vm2, %v1469_v27  ;;  %1434 = vmatmul.mubr.msk.bf16.gmra.mxu1 %vm240_vm2, %v1471_v28 }
  0x32   :  { %1405 = vmatprep.mubr.msk.bf16.mxu0 %vm240_vm2, %v1472_v29  ;;  %1437 = vmatprep.mubr.msk.bf16.mxu1 %vm240_vm2, %v1474_v30 }
  0x39   :  { %1406 = vmatmul.mubr.msk.bf16.gmra.mxu0 %vm240_vm2, %v1473_v31  ;;  %1438 = vmatmul.mubr.msk.bf16.gmra.mxu1 %vm240_vm2, %v1475_v32 }
  0x3a   :  { %1409 = vmatprep.mubr.msk.bf16.mxu0 %vm240_vm2, %v1476_v33 }
  0x41   :  { %1410 = vmatmul.mubr.msk.bf16.gmra.mxu0 %vm240_vm2, %v1477_v34 }
  0xc9   :  { %v1383_v36 = vpop.f32.mrf.mxu0  ;;  %v1415_v37 = vpop.f32.mrf.mxu1 }
  0xca   :  { %v509_v38 = vadd.f32 %v1415_v37, %v1650_v35  ;;  %v381_v39 = vadd.f32 %v1383_v36, %v1650_v35 }
  0xcb   :  { %v372_v40 = vpop.f32.mrf.mxu0  ;;  %v500_v41 = vpop.f32.mrf.mxu1 }
  0xcc   :  { %v501_v43 = vadd.f32 %v1650_v35, %v500_v41  ;;  %v373_v45 = vadd.f32 %v1650_v35, %v372_v40  ;;  %v645_v46 = vmax.f32 %v509_v38, 0.0  ;;  %v613_v49 = vmax.f32 %v381_v39, 0.0 }
  0xcd   :  { %v1384_v42 = vpop.f32.mrf.mxu0  ;;  %v1416_v44 = vpop.f32.mrf.mxu1 }
  0xce   :  { %v384_v47 = vadd.f32 %v1384_v42, %v1650_v35  ;;  %v512_v48 = vadd.f32 %v1416_v44, %v1650_v35  ;;  %v643_v56 = vmax.f32 %v501_v43, 0.0  ;;  %v611_v59 = vmax.f32 %v373_v45, 0.0 }
  0xcf   :  { %v375_v50 = vpop.f32.mrf.mxu0  ;;  %v503_v51 = vpop.f32.mrf.mxu1 }
  0xd0   :  { %v614_v52 = vmax.f32 %v384_v47, 0.0  ;;  %v376_v53 = vadd.f32 %v1650_v35, %v375_v50  ;;  %v646_v54 = vmax.f32 %v512_v48, 0.0  ;;  %v504_v55 = vadd.f32 %v1650_v35, %v503_v51 }
  0xd1   :  { %v1387_v57 = vpop.f32.mrf.mxu0  ;;  %v1419_v58 = vpop.f32.mrf.mxu1 }
  0xd2   :  { %v1177_v60 = vpack.c.bf16 %v614_v52, %v613_v49  ;;  %v612_v61 = vmax.f32 %v376_v53, 0.0  ;;  %v1257_v62 = vpack.c.bf16 %v646_v54, %v645_v46  ;;  %v397_v63 = vadd.f32 %v1387_v57, %v1650_v35 }
  0xd3   :  { %v644_v0 = vmax.f32 %v504_v55, 0.0  ;;  %v388_v1 = vpop.f32.mrf.mxu0  ;;  %v525_v2 = vadd.f32 %v1419_v58, %v1650_v35  ;;  %v516_v3 = vpop.f32.mrf.mxu1 }
  0xd4   :  { %1319 = vst [vmem:[#allocation2 + $0x8] sm:$0xff] %v1177_v60   ;;  %v1172_v4 = vpack.c.bf16 %v612_v61, %v611_v59  ;;  %1335 = vst [vmem:[#allocation2 + $0x88] sm:$0xff] %v1257_v62   ;;  %v517_v7 = vadd.f32 %v1650_v35, %v516_v3  ;;  %v389_v9 = vadd.f32 %v1650_v35, %v388_v1  ;;  %v617_v13 = vmax.f32 %v397_v63, 0.0 }
  0xd5   :  { %v1252_v5 = vpack.c.bf16 %v644_v0, %v643_v56  ;;  %v1388_v6 = vpop.f32.mrf.mxu0  ;;  %v1420_v8 = vpop.f32.mrf.mxu1  ;;  %v649_v10 = vmax.f32 %v525_v2, 0.0 }
  0xd6   :  { %1173 = vst [vmem:[#allocation2] sm:$0xff] %v1172_v4   ;;  %v400_v11 = vadd.f32 %v1388_v6, %v1650_v35  ;;  %v528_v12 = vadd.f32 %v1420_v8, %v1650_v35  ;;  %v647_v20 = vmax.f32 %v517_v7, 0.0  ;;  %v615_v23 = vmax.f32 %v389_v9, 0.0 }
  0xd7   :  { %1334 = vst [vmem:[#allocation2 + $0x80] sm:$0xff] %v1252_v5   ;;  %v391_v14 = vpop.f32.mrf.mxu0  ;;  %v519_v15 = vpop.f32.mrf.mxu1 }
  0xd8   :  { %v618_v16 = vmax.f32 %v400_v11, 0.0  ;;  %v392_v17 = vadd.f32 %v1650_v35, %v391_v14  ;;  %v650_v18 = vmax.f32 %v528_v12, 0.0  ;;  %v520_v19 = vadd.f32 %v1650_v35, %v519_v15 }
  0xd9   :  { %v1391_v21 = vpop.f32.mrf.mxu0  ;;  %v1423_v22 = vpop.f32.mrf.mxu1 }
  0xda   :  { %v1187_v24 = vpack.c.bf16 %v618_v16, %v617_v13  ;;  %v616_v25 = vmax.f32 %v392_v17, 0.0  ;;  %v1267_v26 = vpack.c.bf16 %v650_v18, %v649_v10  ;;  %v413_v27 = vadd.f32 %v1391_v21, %v1650_v35 }
  0xdb   :  { %v648_v28 = vmax.f32 %v520_v19, 0.0  ;;  %v404_v29 = vpop.f32.mrf.mxu0  ;;  %v541_v30 = vadd.f32 %v1423_v22, %v1650_v35  ;;  %v532_v31 = vpop.f32.mrf.mxu1 }
  0xdc   :  { %1321 = vst [vmem:[#allocation2 + $0x18] sm:$0xff] %v1187_v24   ;;  %v1182_v32 = vpack.c.bf16 %v616_v25, %v615_v23  ;;  %1337 = vst [vmem:[#allocation2 + $0x98] sm:$0xff] %v1267_v26   ;;  %v533_v36 = vadd.f32 %v1650_v35, %v532_v31  ;;  %v405_v38 = vadd.f32 %v1650_v35, %v404_v29  ;;  %v621_v42 = vmax.f32 %v413_v27, 0.0 }
  0xdd   :  { %v1262_v33 = vpack.c.bf16 %v648_v28, %v647_v20  ;;  %v1392_v34 = vpop.f32.mrf.mxu0  ;;  %v1424_v37 = vpop.f32.mrf.mxu1  ;;  %v653_v39 = vmax.f32 %v541_v30, 0.0 }
  0xde   :  { %1320 = vst [vmem:[#allocation2 + $0x10] sm:$0xff] %v1182_v32   ;;  %v416_v40 = vadd.f32 %v1392_v34, %v1650_v35  ;;  %v544_v41 = vadd.f32 %v1424_v37, %v1650_v35  ;;  %v651_v49 = vmax.f32 %v533_v36, 0.0  ;;  %v619_v52 = vmax.f32 %v405_v38, 0.0 }
  0xdf   :  { %1336 = vst [vmem:[#allocation2 + $0x90] sm:$0xff] %v1262_v33   ;;  %v407_v43 = vpop.f32.mrf.mxu0  ;;  %v535_v44 = vpop.f32.mrf.mxu1 }
  0xe0   :  { %v622_v45 = vmax.f32 %v416_v40, 0.0  ;;  %v408_v46 = vadd.f32 %v1650_v35, %v407_v43  ;;  %v654_v47 = vmax.f32 %v544_v41, 0.0  ;;  %v536_v48 = vadd.f32 %v1650_v35, %v535_v44 }
  0xe1   :  { %v1395_v50 = vpop.f32.mrf.mxu0  ;;  %v1427_v51 = vpop.f32.mrf.mxu1 }
  0xe2   :  { %v1197_v53 = vpack.c.bf16 %v622_v45, %v621_v42  ;;  %v620_v54 = vmax.f32 %v408_v46, 0.0  ;;  %v1277_v55 = vpack.c.bf16 %v654_v47, %v653_v39  ;;  %v429_v56 = vadd.f32 %v1395_v50, %v1650_v35 }
  0xe3   :  { %v652_v57 = vmax.f32 %v536_v48, 0.0  ;;  %v420_v58 = vpop.f32.mrf.mxu0  ;;  %v557_v59 = vadd.f32 %v1427_v51, %v1650_v35  ;;  %v548_v60 = vpop.f32.mrf.mxu1 }
  0xe4   :  { %1323 = vst [vmem:[#allocation2 + $0x28] sm:$0xff] %v1197_v53   ;;  %v1192_v61 = vpack.c.bf16 %v620_v54, %v619_v52  ;;  %1339 = vst [vmem:[#allocation2 + $0xa8] sm:$0xff] %v1277_v55   ;;  %v549_v0 = vadd.f32 %v1650_v35, %v548_v60  ;;  %v421_v2 = vadd.f32 %v1650_v35, %v420_v58  ;;  %v625_v6 = vmax.f32 %v429_v56, 0.0 }
  0xe5   :  { %v1272_v62 = vpack.c.bf16 %v652_v57, %v651_v49  ;;  %v1396_v63 = vpop.f32.mrf.mxu0  ;;  %v1428_v1 = vpop.f32.mrf.mxu1  ;;  %v657_v3 = vmax.f32 %v557_v59, 0.0 }
  0xe6   :  { %1322 = vst [vmem:[#allocation2 + $0x20] sm:$0xff] %v1192_v61   ;;  %v432_v4 = vadd.f32 %v1396_v63, %v1650_v35  ;;  %v560_v5 = vadd.f32 %v1428_v1, %v1650_v35  ;;  %v655_v13 = vmax.f32 %v549_v0, 0.0  ;;  %v623_v16 = vmax.f32 %v421_v2, 0.0 }
  0xe7   :  { %1338 = vst [vmem:[#allocation2 + $0xa0] sm:$0xff] %v1272_v62   ;;  %v423_v7 = vpop.f32.mrf.mxu0  ;;  %v551_v8 = vpop.f32.mrf.mxu1 }
  0xe8   :  { %v626_v9 = vmax.f32 %v432_v4, 0.0  ;;  %v424_v10 = vadd.f32 %v1650_v35, %v423_v7  ;;  %v658_v11 = vmax.f32 %v560_v5, 0.0  ;;  %v552_v12 = vadd.f32 %v1650_v35, %v551_v8 }
  0xe9   :  { %v1399_v14 = vpop.f32.mrf.mxu0  ;;  %v1431_v15 = vpop.f32.mrf.mxu1 }
  0xea   :  { %v1207_v17 = vpack.c.bf16 %v626_v9, %v625_v6  ;;  %v624_v18 = vmax.f32 %v424_v10, 0.0  ;;  %v1287_v19 = vpack.c.bf16 %v658_v11, %v657_v3  ;;  %v445_v20 = vadd.f32 %v1399_v14, %v1650_v35 }
  0xeb   :  { %v656_v21 = vmax.f32 %v552_v12, 0.0  ;;  %v436_v22 = vpop.f32.mrf.mxu0  ;;  %v573_v23 = vadd.f32 %v1431_v15, %v1650_v35  ;;  %v564_v24 = vpop.f32.mrf.mxu1 }
  0xec   :  { %1325 = vst [vmem:[#allocation2 + $0x38] sm:$0xff] %v1207_v17   ;;  %v1202_v25 = vpack.c.bf16 %v624_v18, %v623_v16  ;;  %1341 = vst [vmem:[#allocation2 + $0xb8] sm:$0xff] %v1287_v19   ;;  %v565_v28 = vadd.f32 %v1650_v35, %v564_v24  ;;  %v437_v30 = vadd.f32 %v1650_v35, %v436_v22  ;;  %v629_v34 = vmax.f32 %v445_v20, 0.0 }
  0xed   :  { %v1282_v26 = vpack.c.bf16 %v656_v21, %v655_v13  ;;  %v1400_v27 = vpop.f32.mrf.mxu0  ;;  %v1432_v29 = vpop.f32.mrf.mxu1  ;;  %v661_v31 = vmax.f32 %v573_v23, 0.0 }
  0xee   :  { %1324 = vst [vmem:[#allocation2 + $0x30] sm:$0xff] %v1202_v25   ;;  %v448_v32 = vadd.f32 %v1400_v27, %v1650_v35  ;;  %v576_v33 = vadd.f32 %v1432_v29, %v1650_v35  ;;  %v659_v42 = vmax.f32 %v565_v28, 0.0  ;;  %v627_v45 = vmax.f32 %v437_v30, 0.0 }
  0xef   :  { %1340 = vst [vmem:[#allocation2 + $0xb0] sm:$0xff] %v1282_v26   ;;  %v439_v36 = vpop.f32.mrf.mxu0  ;;  %v567_v37 = vpop.f32.mrf.mxu1 }
  0xf0   :  { %v630_v38 = vmax.f32 %v448_v32, 0.0  ;;  %v440_v39 = vadd.f32 %v1650_v35, %v439_v36  ;;  %v662_v40 = vmax.f32 %v576_v33, 0.0  ;;  %v568_v41 = vadd.f32 %v1650_v35, %v567_v37 }
  0xf1   :  { %v1403_v43 = vpop.f32.mrf.mxu0  ;;  %v1435_v44 = vpop.f32.mrf.mxu1 }
  0xf2   :  { %v1217_v46 = vpack.c.bf16 %v630_v38, %v629_v34  ;;  %v628_v47 = vmax.f32 %v440_v39, 0.0  ;;  %v1297_v48 = vpack.c.bf16 %v662_v40, %v661_v31  ;;  %v461_v49 = vadd.f32 %v1403_v43, %v1650_v35 }
  0xf3   :  { %v660_v50 = vmax.f32 %v568_v41, 0.0  ;;  %v452_v51 = vpop.f32.mrf.mxu0  ;;  %v589_v52 = vadd.f32 %v1435_v44, %v1650_v35  ;;  %v580_v53 = vpop.f32.mrf.mxu1 }
  0xf4   :  { %1327 = vst [vmem:[#allocation2 + $0x48] sm:$0xff] %v1217_v46   ;;  %v1212_v54 = vpack.c.bf16 %v628_v47, %v627_v45  ;;  %1343 = vst [vmem:[#allocation2 + $0xc8] sm:$0xff] %v1297_v48   ;;  %v581_v57 = vadd.f32 %v1650_v35, %v580_v53  ;;  %v453_v59 = vadd.f32 %v1650_v35, %v452_v51  ;;  %v633_v63 = vmax.f32 %v461_v49, 0.0 }
  0xf5   :  { %v1292_v55 = vpack.c.bf16 %v660_v50, %v659_v42  ;;  %v1404_v56 = vpop.f32.mrf.mxu0  ;;  %v1436_v58 = vpop.f32.mrf.mxu1  ;;  %v665_v60 = vmax.f32 %v589_v52, 0.0 }
  0xf6   :  { %1326 = vst [vmem:[#allocation2 + $0x40] sm:$0xff] %v1212_v54   ;;  %v464_v61 = vadd.f32 %v1404_v56, %v1650_v35  ;;  %v592_v62 = vadd.f32 %v1436_v58, %v1650_v35  ;;  %v663_v6 = vmax.f32 %v581_v57, 0.0  ;;  %v631_v9 = vmax.f32 %v453_v59, 0.0 }
  0xf7   :  { %1342 = vst [vmem:[#allocation2 + $0xc0] sm:$0xff] %v1292_v55   ;;  %v455_v0 = vpop.f32.mrf.mxu0  ;;  %v583_v1 = vpop.f32.mrf.mxu1 }
  0xf8   :  { %v634_v2 = vmax.f32 %v464_v61, 0.0  ;;  %v456_v3 = vadd.f32 %v1650_v35, %v455_v0  ;;  %v666_v4 = vmax.f32 %v592_v62, 0.0  ;;  %v584_v5 = vadd.f32 %v1650_v35, %v583_v1 }
  0xf9   :  { %v1407_v7 = vpop.f32.mrf.mxu0  ;;  %v1439_v8 = vpop.f32.mrf.mxu1 }
  0xfa   :  { %v1227_v10 = vpack.c.bf16 %v634_v2, %v633_v63  ;;  %v632_v11 = vmax.f32 %v456_v3, 0.0  ;;  %v1307_v12 = vpack.c.bf16 %v666_v4, %v665_v60  ;;  %v477_v13 = vadd.f32 %v1407_v7, %v1650_v35 }
  0xfb   :  { %v664_v14 = vmax.f32 %v584_v5, 0.0  ;;  %v468_v15 = vpop.f32.mrf.mxu0  ;;  %v605_v16 = vadd.f32 %v1439_v8, %v1650_v35  ;;  %v596_v17 = vpop.f32.mrf.mxu1 }
  0xfc   :  { %1329 = vst [vmem:[#allocation2 + $0x58] sm:$0xff] %v1227_v10   ;;  %v1222_v18 = vpack.c.bf16 %v632_v11, %v631_v9  ;;  %1345 = vst [vmem:[#allocation2 + $0xd8] sm:$0xff] %v1307_v12   ;;  %v597_v21 = vadd.f32 %v1650_v35, %v596_v17  ;;  %v469_v23 = vadd.f32 %v1650_v35, %v468_v15  ;;  %v637_v27 = vmax.f32 %v477_v13, 0.0 }
  0xfd   :  { %v1302_v19 = vpack.c.bf16 %v664_v14, %v663_v6  ;;  %v1408_v20 = vpop.f32.mrf.mxu0  ;;  %v1440_v22 = vpop.f32.mrf.mxu1  ;;  %v669_v24 = vmax.f32 %v605_v16, 0.0 }
  0xfe   :  { %1328 = vst [vmem:[#allocation2 + $0x50] sm:$0xff] %v1222_v18   ;;  %v480_v25 = vadd.f32 %v1408_v20, %v1650_v35  ;;  %v608_v26 = vadd.f32 %v1440_v22, %v1650_v35  ;;  %v667_v34 = vmax.f32 %v597_v21, 0.0  ;;  %v635_v37 = vmax.f32 %v469_v23, 0.0 }
  0xff   :  { %1344 = vst [vmem:[#allocation2 + $0xd0] sm:$0xff] %v1302_v19   ;;  %v471_v28 = vpop.f32.mrf.mxu0  ;;  %v599_v29 = vpop.f32.mrf.mxu1 }
 0x100   :  { %v638_v30 = vmax.f32 %v480_v25, 0.0  ;;  %v472_v31 = vadd.f32 %v1650_v35, %v471_v28  ;;  %v670_v32 = vmax.f32 %v608_v26, 0.0  ;;  %v600_v33 = vadd.f32 %v1650_v35, %v599_v29 }
 0x101   :  { %v1411_v36 = vpop.f32.mrf.mxu0 }
 0x102   :  { %v1237_v38 = vpack.c.bf16 %v638_v30, %v637_v27  ;;  %v636_v39 = vmax.f32 %v472_v31, 0.0  ;;  %v1317_v40 = vpack.c.bf16 %v670_v32, %v669_v24  ;;  %v668_v41 = vmax.f32 %v600_v33, 0.0 }
 0x103   :  { %v484_v42 = vpop.f32.mrf.mxu0  ;;  %v493_v44 = vadd.f32 %v1411_v36, %v1650_v35 }
 0x104   :  { %1331 = vst [vmem:[#allocation2 + $0x68] sm:$0xff] %v1237_v38   ;;  %v1232_v43 = vpack.c.bf16 %v636_v39, %v635_v37  ;;  %1347 = vst [vmem:[#allocation2 + $0xe8] sm:$0xff] %v1317_v40   ;;  %v1312_v45 = vpack.c.bf16 %v668_v41, %v667_v34  ;;  %v485_v47 = vadd.f32 %v1650_v35, %v484_v42 }
 0x105   :  { %v1412_v46 = vpop.f32.mrf.mxu0  ;;  %v641_v50 = vmax.f32 %v493_v44, 0.0 }
 0x106   :  { %1330 = vst [vmem:[#allocation2 + $0x60] sm:$0xff] %v1232_v43   ;;  %v496_v48 = vadd.f32 %v1412_v46, %v1650_v35  ;;  %1346 = vst [vmem:[#allocation2 + $0xe0] sm:$0xff] %v1312_v45   ;;  %v639_v53 = vmax.f32 %v485_v47, 0.0 }
 0x107   :  { %v487_v49 = vpop.f32.mrf.mxu0 }
 0x108   :  { %v642_v51 = vmax.f32 %v496_v48, 0.0  ;;  %v488_v52 = vadd.f32 %v1650_v35, %v487_v49 }
 0x10a   :  { %v1247_v54 = vpack.c.bf16 %v642_v51, %v641_v50  ;;  %v640_v55 = vmax.f32 %v488_v52, 0.0 }
 0x10c   :  { %1333 = vst [vmem:[#allocation2 + $0x78] sm:$0xff] %v1247_v54   ;;  %v1242_v56 = vpack.c.bf16 %v640_v55, %v639_v53 }
 0x10e   :  { %1332 = vst [vmem:[#allocation2 + $0x70] sm:$0xff] %v1242_v56  }
 0x10f   :  { %1489 = shalt.err (!%p1486_p4)
}
 0x110   :  { %s1502_s20 = smov 64   ;;  %s1503_s21 = smov 4  }
 0x111   :  { %982 = dma.vmem_to_hbm [thread:$0]  %s977_s2, 3840, %s1718_s3, [#allocation3], %s1502_s20, %s1502_s20, %s1503_s21  }
 0x112   :  { %1498 = dma.done.wait [#allocation3], 3840  }
 0x113   :  { %1499 = vsyncadd [#allocation3], 4294963456 }
 0x114   :  { %986 = vsyncpa [#allocation3], 1 }

</bundles_post_ra>
